<compile_context>
chip_gen: v5e
topology: v5e:2x2
jax: 0.10.0
libtpu: 0.0.40
codegen_flags: <defaults>
</compile_context>

<pallas_src>
import functools

import jax
import jax.numpy as jnp
from jax.experimental import pallas as pl
from jax.experimental.pallas import tpu as pltpu

_PAIRWISE_EPS = 1e-6        # torch.nn.functional.pairwise_distance default eps
_ROW_MULT = 16              # row-tile multiple valid for f32 (8) and bf16 (16) sublane packing
_MAX_FOLD = 32              # cap on rows folded into one lane-dense kernel row
_TARGET_TILE_BYTES = 4 << 20  # ~4 MiB per input tile per pipeline buffer (>=85% HBM roofline regime)


def _round_up(x, m):
    return ((x + m - 1) // m) * m


def _vmem_budget_bytes():
    """Steady-state VMEM the pipeline may hold (both inputs + label, double buffered)."""
    try:
        cap = int(pltpu.get_tpu_info().vmem_capacity_bytes)
        # Leave headroom for Mosaic internal scratch; v7x only has 64 MiB physical.
        return min(int(cap * 0.6), 48 << 20)
    except Exception:
        return 40 << 20


def _tensorcores_per_device():
    """Best-effort TC count behind one JAX device.

    The chunked 'parallel' axis only pays off when a single device drives >1
    TensorCore (v4/v5p megacore, v7x).  On single-TC chips it merely adds a
    (cheap) extra grid dimension, so default to 1 there.
    """
    try:
        kind = jax.devices()[0].device_kind.lower()
    except Exception:
        return 2
    single_tc = ("v2", "v3", "v5 lite", "v5e", "v5litepod", "v6 lite", "v6lite", "v6e")
    if any(tag in kind for tag in single_tc):
        return 1
    return 2


def _contrastive_kernel(x1_ref, x2_ref, lbl_ref, out_ref, *,
                        margin, true_b, rows_per_tile, nt, g, d_feat, need_mask):
    c = pl.program_id(0)   # chunk (parallel axis -> megacore / 2-TC sharding)
    t = pl.program_id(1)   # tile within chunk (reduction axis, last)

    # Zero the per-chunk resident accumulator block at the start of each chunk.
    @pl.when(t == 0)
    def _():
        out_ref[...] = jnp.zeros_like(out_ref)

    # Cast from native dtype (bf16/f32/...) happens here, on the VMEM tile.
    x1 = x1_ref[...].astype(jnp.float32)     # (tbk, g*d_feat)  lane-dense when folded
    x2 = x2_ref[...].astype(jnp.float32)
    lbl = lbl_ref[...].astype(jnp.float32)   # (tbk, g)

    diff = x1 - x2 + _PAIRWISE_EPS           # torch adds eps to the difference
    sq = diff * diff

    if g == 1:
        ssq = jnp.sum(sq, axis=-1, keepdims=True)                     # (tbk, 1)
    else:
        # Exact f32 segmented sum over the g folded rows packed in the lane dim:
        # g static contiguous lane slices, one lane-reduction each.
        parts = [
            jnp.sum(sq[:, j * d_feat:(j + 1) * d_feat], axis=-1, keepdims=True)
            for j in range(g)
        ]
        ssq = jnp.concatenate(parts, axis=-1)                          # (tbk, g)

    dist = jnp.sqrt(ssq)                                               # EUP sqrt
    hinge = jnp.maximum(margin - dist, 0.0)
    per_row = (1.0 - lbl) * ssq + lbl * (hinge * hinge)                # (tbk, g)

    if need_mask:
        # Mask original rows past the true batch size (zero-padded tail tiles).
        row0 = (c * nt + t) * (rows_per_tile * g)
        rid = jax.lax.broadcasted_iota(jnp.int32, per_row.shape, 0)
        gid = jax.lax.broadcasted_iota(jnp.int32, per_row.shape, 1)
        per_row = jnp.where(row0 + rid * g + gid < true_b, per_row, 0.0)

    # Scalar accumulate into the chunk's resident (1,1,1) output block.
    out_ref[...] += jnp.sum(per_row, keepdims=True)[None]


def contrastive_loss(output1, output2, label, epsilon=1.0, *,
                     block_rows=None, num_chunks=None):
    """output1/output2: (B, D) in native dtype; label: (B,) or (B, 1).

    Returns a scalar f32 loss matching the PyTorch module (to ~1e-5).
    """
    B, D = output1.shape
    itemsize = jnp.dtype(output1.dtype).itemsize
    label1d = jnp.reshape(label, (B,)).astype(jnp.float32)

    # --- small-D row folding: (B, D) -> (B/g, g*D) lane-dense view -------------
    if D < 128 and 128 % D == 0:
        g = min(128 // D, _MAX_FOLD)
    else:
        g = 1
    Dk = g * D                                   # kernel feature width (=128 when fully folded)
    Bk = pl.cdiv(B, g)                           # folded rows needed

    # --- bytes-targeted tile size with padded-VMEM accounting ------------------
    lane_dk = _round_up(Dk, 128)                 # lane padding of the input tiles
    in_row_bytes = lane_dk * itemsize            # one input, one pipeline buffer, per folded row
    lbl_row_bytes = 128 * 4                      # (tbk, g) f32 label lane-pads to 128
    vmem_row_bytes = 2 * 2 * in_row_bytes + 2 * lbl_row_bytes   # 2 inputs x 2 bufs + 2 label bufs

    budget = _vmem_budget_bytes()
    if block_rows is None:
        tbk = _TARGET_TILE_BYTES // in_row_bytes
    else:
        tbk = int(block_rows)
    tbk = min(tbk, max(_ROW_MULT, budget // vmem_row_bytes))
    tbk = max(_ROW_MULT, (tbk // _ROW_MULT) * _ROW_MULT)
    tbk = min(tbk, _round_up(Bk, _ROW_MULT))

    # --- grid: (chunks, tiles-per-chunk); reduction axis last ------------------
    n_tiles = pl.cdiv(Bk, tbk)
    cores = _tensorcores_per_device() if num_chunks is None else int(num_chunks)
    nc = cores if (cores > 1 and n_tiles >= cores) else 1
    nt = pl.cdiv(n_tiles, nc)
    bk_pad = nc * nt * tbk
    b_pad = bk_pad * g
    need_mask = b_pad != B

    if need_mask:
        pad = b_pad - B
        output1 = jnp.pad(output1, ((0, pad), (0, 0)))
        output2 = jnp.pad(output2, ((0, pad), (0, 0)))
        label1d = jnp.pad(label1d, ((0, pad),))

    # Free views (contiguous row-major reshape), no extra HBM pass.
    x1 = jnp.reshape(output1, (bk_pad, Dk))
    x2 = jnp.reshape(output2, (bk_pad, Dk))
    lbl = jnp.reshape(label1d, (bk_pad, g))

    vmem_needed = vmem_row_bytes * tbk + (1 << 20)          # + misc / output
    vmem_limit = max(vmem_needed + (4 << 20), 16 << 20)     # explicit scoped-VMEM limit
    vmem_limit = min(vmem_limit, 128 << 20)

    kernel = functools.partial(
        _contrastive_kernel,
        margin=float(epsilon), true_b=B, rows_per_tile=tbk, nt=nt,
        g=g, d_feat=D, need_mask=need_mask)

    cost = pl.CostEstimate(
        flops=int(B * (4 * D + 12)),
        transcendentals=int(B),
        bytes_accessed=int(2 * b_pad * D * itemsize + b_pad * 4 + nc * 4),
    )

    out = pl.pallas_call(
        kernel,
        out_shape=jax.ShapeDtypeStruct((nc, 1, 1), jnp.float32),
        grid_spec=pltpu.PrefetchScalarGridSpec(
            num_scalar_prefetch=0,
            grid=(nc, nt),
            in_specs=[
                pl.BlockSpec((tbk, Dk), lambda c, t: (c * nt + t, 0)),
                pl.BlockSpec((tbk, Dk), lambda c, t: (c * nt + t, 0)),
                pl.BlockSpec((tbk, g), lambda c, t: (c * nt + t, 0)),
            ],
            out_specs=pl.BlockSpec((1, 1, 1), lambda c, t: (c, 0, 0)),
        ),
        compiler_params=pltpu.CompilerParams(
            dimension_semantics=("parallel", "arbitrary"),
            vmem_limit_bytes=int(vmem_limit)),
        cost_estimate=cost,
    )(x1, x2, lbl)   # native dtype goes straight in; cast happens in-kernel

    return jnp.sum(out) / B


def _reference(output1, output2, label, epsilon=1.0):
    diff = output1 - output2 + _PAIRWISE_EPS
    d = jnp.sqrt(jnp.sum(diff * diff, axis=-1))
    return jnp.mean((1.0 - label) * d ** 2 + label * jnp.maximum(epsilon - d, 0.0) ** 2)


if __name__ == "__main__":
    key = jax.random.PRNGKey(0)
    k1, k2, k3 = jax.random.split(key, 3)

    # Small-D folded path (D=32 -> g=4).  Ragged batch exercises padding + the
    # in-kernel tail mask; tiny block_rows forces a multi-tile pipelined grid.
    B, D = 104, 32
    o1 = jax.random.normal(k1, (B, D), dtype=jnp.float32)
    o2 = jax.random.normal(k2, (B, D), dtype=jnp.float32)
    lab = jax.random.bernoulli(k3, 0.5, (B,)).astype(jnp.float32)
    ref = _reference(o1, o2, lab, 1.0)

    loss = contrastive_loss(o1, o2, lab, epsilon=1.0, block_rows=16)
    jax.block_until_ready(loss)
    assert jnp.allclose(loss, ref, atol=1e-5, rtol=1e-5), (loss, ref)

    # Default (bytes-targeted) tiling, f32.
    loss2 = contrastive_loss(o1, o2, lab, epsilon=1.0)
    jax.block_until_ready(loss2)
    assert jnp.allclose(loss2, ref, atol=1e-5, rtol=1e-5), (loss2, ref)

    # Native bf16 path (no wrapper upcast; cast happens inside the kernel).
    loss_bf16 = contrastive_loss(o1.astype(jnp.bfloat16), o2.astype(jnp.bfloat16), lab, 1.0)
    jax.block_until_ready(loss_bf16)
    ref_bf16 = _reference(o1.astype(jnp.bfloat16).astype(jnp.float32),
                          o2.astype(jnp.bfloat16).astype(jnp.float32), lab, 1.0)
    assert jnp.allclose(loss_bf16, ref_bf16, atol=1e-4, rtol=1e-4), (loss_bf16, ref_bf16)

    # Un-folded fallback path (D not a divisor of 128), aligned batch (no mask).
    B2, D2 = 64, 160
    p1 = jax.random.normal(k1, (B2, D2), dtype=jnp.float32)
    p2 = jax.random.normal(k2, (B2, D2), dtype=jnp.float32)
    lab2 = jax.random.bernoulli(k3, 0.5, (B2,)).astype(jnp.float32)
    loss3 = contrastive_loss(p1, p2, lab2, epsilon=1.0)
    jax.block_until_ready(loss3)
    ref3 = _reference(p1, p2, lab2, 1.0)
    assert jnp.allclose(loss3, ref3, atol=1e-5, rtol=1e-5), (loss3, ref3)

    print("KERNEL_OK")
</pallas_src>

<mosaic_0001>
module attributes {stable_mosaic.version = 11 : i64} {
  func.func @_contrastive_kernel(%arg0: i32, %arg1: i32, %arg2: memref<16x128xf32, #tpu.memory_space<vmem>>, %arg3: memref<16x128xf32, #tpu.memory_space<vmem>>, %arg4: memref<16x4xf32, #tpu.memory_space<vmem>>, %arg5: memref<1x1x1xf32, #tpu.memory_space<vmem>>) attributes {dimension_semantics = [#tpu.dimension_semantics<parallel>, #tpu.dimension_semantics<arbitrary>], iteration_bounds = array<i64: 2, 1>, scalar_prefetch = 0 : i64, scratch_operands = 0 : i64, tpu.core_type = #tpu.core_type<tc>, window_params = [{transform_indices = @transform_0, window_bounds = array<i64: 16, 128>}, {transform_indices = @transform_1, window_bounds = array<i64: 16, 128>}, {transform_indices = @transform_2, window_bounds = array<i64: 16, 4>}, {transform_indices = @transform_3, window_bounds = array<i64: 1, 1, 1>}]} {
    %c0_i32 = arith.constant 0 : i32
    %0 = arith.cmpi eq, %arg1, %c0_i32 : i32
    %1 = arith.extui %0 : i1 to i32
    %c0_i32_0 = arith.constant 0 : i32
    %2 = arith.cmpi ne, %1, %c0_i32_0 : i32
    scf.if %2 {
      %cst_21 = arith.constant 0.000000e+00 : f32
      %57 = vector.broadcast %cst_21 : f32 to vector<1x1x1xf32>
      %c0_22 = arith.constant 0 : index
      %c0_23 = arith.constant 0 : index
      %c0_24 = arith.constant 0 : index
      %58 = vector.load %arg5[%c0_22, %c0_23, %c0_24] : memref<1x1x1xf32, #tpu.memory_space<vmem>>, vector<1x1x1xf32>
      tpu.vector_store %arg5[%c0_22, %c0_23, %c0_24], %57 {strides = array<i32>} : memref<1x1x1xf32, #tpu.memory_space<vmem>>, vector<1x1x1xf32>,
    } else {
    }
    %c0 = arith.constant 0 : index
    %c0_1 = arith.constant 0 : index
    %3 = vector.load %arg2[%c0, %c0_1] : memref<16x128xf32, #tpu.memory_space<vmem>>, vector<16x128xf32>
    %c0_2 = arith.constant 0 : index
    %c0_3 = arith.constant 0 : index
    %4 = vector.load %arg3[%c0_2, %c0_3] : memref<16x128xf32, #tpu.memory_space<vmem>>, vector<16x128xf32>
    %c0_4 = arith.constant 0 : index
    %c0_5 = arith.constant 0 : index
    %5 = vector.load %arg4[%c0_4, %c0_5] : memref<16x4xf32, #tpu.memory_space<vmem>>, vector<16x4xf32>
    %6 = arith.subf %3, %4 : vector<16x128xf32>
    %cst = arith.constant 9.99999997E-7 : f32
    %7 = vector.broadcast %cst : f32 to vector<16x128xf32>
    %8 = arith.addf %6, %7 : vector<16x128xf32>
    %9 = arith.mulf %8, %8 : vector<16x128xf32>
    %10 = vector.extract_strided_slice %9 {offsets = [0, 0], sizes = [16, 32], strides = [1, 1]} : vector<16x128xf32> to vector<16x32xf32>
    %cst_6 = arith.constant dense<0.000000e+00> : vector<16xf32>
    %11 = vector.multi_reduction <add>, %10, %cst_6 [1] : vector<16x32xf32> to vector<16xf32>
    %12 = vector.shape_cast %11 : vector<16xf32> to vector<16x1xf32>
    %13 = vector.extract_strided_slice %9 {offsets = [0, 32], sizes = [16, 32], strides = [1, 1]} : vector<16x128xf32> to vector<16x32xf32>
    %cst_7 = arith.constant dense<0.000000e+00> : vector<16xf32>
    %14 = vector.multi_reduction <add>, %13, %cst_7 [1] : vector<16x32xf32> to vector<16xf32>
    %15 = vector.shape_cast %14 : vector<16xf32> to vector<16x1xf32>
    %16 = vector.extract_strided_slice %9 {offsets = [0, 64], sizes = [16, 32], strides = [1, 1]} : vector<16x128xf32> to vector<16x32xf32>
    %cst_8 = arith.constant dense<0.000000e+00> : vector<16xf32>
    %17 = vector.multi_reduction <add>, %16, %cst_8 [1] : vector<16x32xf32> to vector<16xf32>
    %18 = vector.shape_cast %17 : vector<16xf32> to vector<16x1xf32>
    %19 = vector.extract_strided_slice %9 {offsets = [0, 96], sizes = [16, 32], strides = [1, 1]} : vector<16x128xf32> to vector<16x32xf32>
    %cst_9 = arith.constant dense<0.000000e+00> : vector<16xf32>
    %20 = vector.multi_reduction <add>, %19, %cst_9 [1] : vector<16x32xf32> to vector<16xf32>
    %21 = vector.shape_cast %20 : vector<16xf32> to vector<16x1xf32>
    %22 = tpu.concatenate %12, %15, %18, %21 in 1 : vector<16x1xf32>, vector<16x1xf32>, vector<16x1xf32>, vector<16x1xf32> -> vector<16x4xf32>
    %23 = math.sqrt %22 : vector<16x4xf32>
    %cst_10 = arith.constant 1.000000e+00 : f32
    %24 = vector.broadcast %cst_10 : f32 to vector<16x4xf32>
    %25 = arith.subf %24, %23 : vector<16x4xf32>
    %cst_11 = arith.constant 0.000000e+00 : f32
    %26 = vector.broadcast %cst_11 : f32 to vector<16x4xf32>
    %27 = arith.maximumf %25, %26 : vector<16x4xf32>
    %cst_12 = arith.constant 1.000000e+00 : f32
    %28 = vector.broadcast %cst_12 : f32 to vector<16x4xf32>
    %29 = arith.subf %28, %5 : vector<16x4xf32>
    %30 = arith.mulf %29, %22 : vector<16x4xf32>
    %31 = arith.mulf %27, %27 : vector<16x4xf32>
    %32 = arith.mulf %5, %31 : vector<16x4xf32>
    %33 = arith.addf %30, %32 : vector<16x4xf32>
    %c1_i32 = arith.constant 1 : i32
    %34 = arith.muli %arg0, %c1_i32 : i32
    %35 = arith.addi %34, %arg1 : i32
    %c64_i32 = arith.constant 64 : i32
    %36 = arith.muli %35, %c64_i32 : i32
    %37 = tpu.iota {dimensions = array<i32: 0>} : vector<16x4xi32>
    %38 = tpu.iota {dimensions = array<i32: 1>} : vector<16x4xi32>
    %c4_i32 = arith.constant 4 : i32
    %39 = vector.broadcast %c4_i32 : i32 to vector<16x4xi32>
    %40 = arith.muli %37, %39 : vector<16x4xi32>
    %41 = vector.broadcast %36 : i32 to vector<16x4xi32>
    %42 = arith.addi %41, %40 : vector<16x4xi32>
    %43 = arith.addi %42, %38 : vector<16x4xi32>
    %c104_i32 = arith.constant 104 : i32
    %44 = vector.broadcast %c104_i32 : i32 to vector<16x4xi32>
    %45 = arith.cmpi slt, %43, %44 : vector<16x4xi32>
    %cst_13 = arith.constant 0.000000e+00 : f32
    %46 = vector.broadcast %cst_13 : f32 to vector<16x4xf32>
    %47 = arith.select %45, %33, %46 : vector<16x4xi1>, vector<16x4xf32>
    %c0_14 = arith.constant 0 : index
    %c0_15 = arith.constant 0 : index
    %c0_16 = arith.constant 0 : index
    %48 = vector.load %arg5[%c0_14, %c0_15, %c0_16] : memref<1x1x1xf32, #tpu.memory_space<vmem>>, vector<1x1x1xf32>
    %49 = vector.shape_cast %47 : vector<16x4xf32> to vector<1x16x4xf32>
    %cst_17 = arith.constant dense<0.000000e+00> : vector<1xf32>
    %50 = vector.multi_reduction <add>, %49, %cst_17 [1, 2] : vector<1x16x4xf32> to vector<1xf32>
    %51 = vector.shape_cast %50 : vector<1xf32> to vector<1x1x1xf32>
    %52 = vector.extract %51[0, 0, 0] : f32 from vector<1x1x1xf32>
    %53 = vector.broadcast %52 : f32 to vector<1x1xf32>
    %54 = vector.shape_cast %53 : vector<1x1xf32> to vector<1x1x1xf32>
    %55 = arith.addf %48, %54 : vector<1x1x1xf32>
    %c0_18 = arith.constant 0 : index
    %c0_19 = arith.constant 0 : index
    %c0_20 = arith.constant 0 : index
    %56 = vector.load %arg5[%c0_18, %c0_19, %c0_20] : memref<1x1x1xf32, #tpu.memory_space<vmem>>, vector<1x1x1xf32>
    tpu.vector_store %arg5[%c0_18, %c0_19, %c0_20], %55 {strides = array<i32>} : memref<1x1x1xf32, #tpu.memory_space<vmem>>, vector<1x1x1xf32>,
    return
  }
  func.func @transform_0(%arg0: i32, %arg1: i32) -> (i32, i32) {
    %c1_i32 = arith.constant 1 : i32
    %0 = arith.muli %arg0, %c1_i32 : i32
    %1 = arith.addi %0, %arg1 : i32
    %c0_i32 = arith.constant 0 : i32
    %c0_i32_0 = arith.constant 0 : i32
    return %1, %c0_i32 : i32, i32
  }
  func.func @transform_1(%arg0: i32, %arg1: i32) -> (i32, i32) {
    %c1_i32 = arith.constant 1 : i32
    %0 = arith.muli %arg0, %c1_i32 : i32
    %1 = arith.addi %0, %arg1 : i32
    %c0_i32 = arith.constant 0 : i32
    %c0_i32_0 = arith.constant 0 : i32
    return %1, %c0_i32 : i32, i32
  }
  func.func @transform_2(%arg0: i32, %arg1: i32) -> (i32, i32) {
    %c1_i32 = arith.constant 1 : i32
    %0 = arith.muli %arg0, %c1_i32 : i32
    %1 = arith.addi %0, %arg1 : i32
    %c0_i32 = arith.constant 0 : i32
    %c0_i32_0 = arith.constant 0 : i32
    return %1, %c0_i32 : i32, i32
  }
  func.func @transform_3(%arg0: i32, %arg1: i32) -> (i32, i32, i32) {
    %c0_i32 = arith.constant 0 : i32
    %c0_i32_0 = arith.constant 0 : i32
    %c0_i32_1 = arith.constant 0 : i32
    return %arg0, %c0_i32, %c0_i32_0 : i32, i32, i32
  }
}

</mosaic_0001>

<bundles_post_ra>
// kernel: tpu_custom_call.1
= control target key start
LH: loop header
LB: loop body
LE: loop exit
PB: predicated region body
PF: predicated region fallthrough
CT: control target
= control target key end

     0   :  { %8 = vsyncpa [#allocation3], 0  ;;  %s805_s0 = inlined_call_operand.vmem [shape: f32[32,128], index: 0, kind: input, shape index: {}]   ;;  %s806_s1 = inlined_call_operand.hbm [shape: f32[32,128], index: 1, kind: input, shape index: {}]   ;;  %s807_s2 = inlined_call_operand.vmem [shape: f32[32,4], index: 2, kind: input, shape index: {}]   ;;  %s808_s3 = inlined_call_operand.vmem [shape: f32[2,1,1], index: 3, kind: output, shape index: {}]  }
   0x1   :  { %10 = vsyncpa [#allocation3 + $0x1], 0  ;;  %s694_s12 = smov 0   ;;  %s696_s13 = smov 0  }
   0x2   :  { %s698_s14 = smov 0   ;;  %s700_s15 = smov 0  }
   0x3   :  { %s702_s16 = smov 0   ;;  %s704_s17 = smov 0  }
   0x4 LB: > { %s502_s18 = sadd.s32 4294967295, %s666_s17   ;;  %s28_s19 = sadd.s32 1, %s662_s16  ;;  %s666_s17 = sphi %s704_s17, %s16_s17   ;;  %s662_s16 = sphi %s702_s16, %s815_s16   ;;  %s658_s15 = sphi %s700_s15, %s814_s15   ;;  %s654_s14 = sphi %s698_s14, %s813_s14   ;;  %s650_s13 = sphi %s696_s13, %s812_s13   ;;  %s646_s12 = sphi %s694_s12, %s811_s12  }
   0x5   : > { %p30_p0 = scmp.ge.s32.totalorder %s28_s19, 2  ;;  %s65_s20 = sadd.s32 1, %s654_s14 }
   0x6   : > { %p72_p1 = scmp.ne.s32.totalorder %s654_s14, %s650_s13  ;;  %p73_p2 = scmp.eq.s32.totalorder %s666_s17, 0 }
   0x7   : > { %s817_s19 = smov (%p30_p0, %s28_s19), 0  ;;  %p78_p4 = scmp.ne.s32.totalorder %s650_s13, %s646_s12 }
   0x8   : > { %p730_p3 = por %p73_p2, %p72_p1  ;;  %s62_s22 = ssub.s32 %s662_s16, %s817_s19 }
   0x9   : > { %p79_p5 = scmp.eq.s32.totalorder %s502_s18, 0  ;;  %p63_p6 = scmp.eq.s32.totalorder %s62_s22, 0 }
   0xa   : > { %p527_p8 = scmp.lt.s32.totalorder %s666_s17, 2  ;;  %s167_s25 = sand.u32 1, %s654_s14  }
   0xb   : > { %p737_p7 = por %p79_p5, %p78_p4  ;;  %s518_s26 = sshll.u32 %s662_s16, 4 }
   0xc   : > { %s743_s24 = scalar_select %p63_p6, %s654_s14, %s65_s20  }
   0xd   : > { %s506_s27 = sshll.u32 %s167_s25, 4  ;;  %s177_s30 = scalar_lea.hbm %s806_s1, %s518_s26 }
   0xe   : > { %s178_s4 = sshll.u32 %s177_s30, 4  ;;  %s171_s5 = scalar_lea.vmem [#allocation2], %s506_s27  ;;  %s179_s4 = int_to_ptr.hbm [resolvable:$true] %s178_s4 }
   0xf   : > { %s180_s6 = sshll.u32 %s171_s5, 4  ;;  %p524_p9 = pnand %p527_p8, %p730_p3  ;;  %s181_s6 = int_to_ptr.vmem [resolvable:$true] %s180_s6 }
  0x10   : > { %p509_p10 = scmp.ge.s32.totalorder %s666_s17, 1  ;;  %p199_p11 = scmp.lt.s32.totalorder %s666_s17, 3 }
  0x11   : > { %s168_s7 = scalar_lea.sflag [#allocation3], %s167_s25  ;;  %s668_s8 = smov 128  }
  0x12   : > { %s669_s9 = smov 8   ;;  %p200_p12 = pnand %p509_p10, %p199_p11 }
  0x13   : > { %526 = dma.hbm_to_vmem [thread:$0]  (!%p524_p9), %s179_s4, 256, %s181_s6, %s168_s7, %s668_s8, %s668_s8, %s669_s9  }
  0x14   : > { %203 = sbr.rel (%p200_p12) target bundleno = 505 (0x1f9), region = 32  ;;  %s205_s10 = sand.u32 (!%p200_p12), 1, %s650_s13  }
  0x15   : > { %s510_s11 = sshll.u32 (!%p200_p12), %s205_s10, 4  ;;  %s206_s12 = scalar_lea.sflag (!%p200_p12), [#allocation3], %s205_s10 }
  0x16   : > { %s209_s18 = scalar_lea.vmem (!%p200_p12), [#allocation2], %s510_s11 }
  0x19   : > { %641 = dma.done.wait (%p737_p7), %s206_s12, 256  }
  0x1a   : > { %643 = vsyncadd (%p737_p7), %s206_s12, 4294967040  ;;  %s511_s20 = sshll.u32 %s658_s15, 1  ;;  %v272_v1 = vld [vmem:[%s209_s18] sm:$0xff]  ;;  %v273_v4 = vld [vmem:[%s209_s18 + $0x8] sm:$0xff]  ;;  %s670_s23 = smov 96   ;;  %vm282_vm0 = vcmask 261120   ;;  %v376_v40 = vlaneseq }
  0x1b   : > { %p245_p13 = scmp.lt.s32.totalorder %s511_s20, 3  ;;  %s671_s27 = smov 64   ;;  %vm327_vm1 = vcmask 7168   ;;  %vm333_vm2 = vcmask 23552   ;;  %vm330_vm3 = vcmask 15360   ;;  %vm393_vm10 = vcmask 31744  }
  0x1c   : > { %s672_s28 = smov 32   ;;  %v377_v44 = vshrl.u32 %v376_v40, 7  ;;  %s515_s29 = sshll.u32 %s658_s15, 6  ;;  %vm268_vm11 = vcmask 0  }
  0x1d   : > { %s819_s20 = smov (!%p245_p13, %s511_s20), 3  ;;  %v383_v59 = vstv %s515_s29  ;;  %p261_p0 = scmp.lt.s32.totalorder %s658_s15, 1 }
  0x1e   : > { %s512_s21 = sshll.u32 %s819_s20, 3  ;;  %v378_v49 = vadd.s32 8, %v377_v44  ;;  %v381_v61 = vmul.u32 4, %v377_v44 }
  0x1f   : > { %s248_s26 = scalar_lea.vmem %s805_s0, %s512_s21  ;;  %s258_s5 = scalar_lea.vmem %s807_s2, %s512_s21 }
  0x20   : > { %v270_v0 = vld [vmem:[%s248_s26] sm:$0xff]  ;;  %v271_v2 = vld [vmem:[%s248_s26 + $0x8] sm:$0xff]  ;;  %v382_v56 = vmul.u32 4, %v378_v49  ;;  %s821_s15 = smov (!%p261_p0, %s658_s15), 1 }
  0x21   : > { %v276_v3 = vsub.f32 %v270_v0, %v272_v1  ;;  %v277_v6 = vsub.f32 %v271_v2, %v273_v4  ;;  %v275_v60 = vld [vmem:[%s258_s5 + $0x8] sm:$0xff]  ;;  %v380_v1 = vand.u32 127, %v376_v40  ;;  %s263_s8 = scalar_lea.vmem %s808_s3, %s821_s15 }
  0x22   : > { %v385_v2 = vadd.s32 %v383_v59, %v382_v56  ;;  %v365_v4 = vsub.f32 1.0, %v275_v60 }
  0x23   : > { %v278_v5 = vadd.f32 1e-06, %v276_v3  ;;  %v279_v8 = vadd.f32 1e-06, %v277_v6  ;;  %v274_v6 = vld [vmem:[%s258_s5] sm:$0xff] }
  0x25   : > { %v280_v7 = vmul.f32 %v278_v5, %v278_v5  ;;  %v281_v9 = vmul.f32 %v279_v8, %v279_v8  ;;  %v384_v8 = vadd.s32 %v383_v59, %v381_v61 }
  0x27   : > { %291 = vrot.lane.b32.xlu0 %v280_v7, %s670_s23  ;;  %303 = vrot.lane.b32.xlu1 %v280_v7, %s671_s27  ;;  %v283_v10 = vsel %vm282_vm0, %v280_v7, 0.0  ;;  %v286_v11 = vsel %vm282_vm0, %v281_v9, 0.0 }
  0x28   : > { %315 = vrot.lane.b32.xlu2 %v280_v7, %s672_s28 }
  0x2f   : > { %293 = vrot.lane.b32.xlu0 %v281_v9, %s670_s23  ;;  %305 = vrot.lane.b32.xlu1 %v281_v9, %s671_s27 }
  0x30   : > { %317 = vrot.lane.b32.xlu2 %v281_v9, %s672_s28 }
  0x59   : > { %284 = vadd.xlane.f32.xlu0 %v283_v10  ;;  %287 = vadd.xlane.f32.xlu1 %v286_v11  ;;  %v387_v11 = vadd.s32 %v385_v2, %v380_v1 }
  0x5b   : > { %vm389_vm8 = vcmp.lt.s32.totalorder %v387_v11, 104 }
  0x82   : > { %v316_v12 = vpop.permute.xlu2 %315 }
  0x83   : > { %v321_v23 = vsel %vm282_vm0, %v316_v12, 0.0 }
  0x8a   : > { %v318_v17 = vpop.permute.xlu2 %317 }
  0x8b   : > { %v324_v20 = vsel %vm282_vm0, %v318_v17, 0.0 }
  0x99   : > { %v292_v13 = vpop.permute.xlu0 %291  ;;  %v304_v14 = vpop.permute.xlu1 %303 }
  0x9a   : > { %v297_v15 = vsel %vm282_vm0, %v292_v13, 0.0  ;;  %v309_v16 = vsel %vm282_vm0, %v304_v14, 0.0  ;;  %v364_v13 = vsub.f32 1.0, %v274_v6 }
  0x9b   : > { %298 = vadd.xlane.f32.xlu2 %v297_v15  ;;  %310 = vadd.xlane.f32.xlu0 %v309_v16  ;;  %v386_v15 = vadd.s32 %v384_v8, %v380_v1 }
  0x9d   : > { %vm388_vm9 = vcmp.lt.s32.totalorder %v386_v15, 104 }
  0xa1   : > { %v294_v18 = vpop.permute.xlu0 %293  ;;  %v306_v19 = vpop.permute.xlu1 %305 }
  0xa2   : > { %v300_v21 = vsel %vm282_vm0, %v294_v18, 0.0  ;;  %v312_v22 = vsel %vm282_vm0, %v306_v19, 0.0 }
  0xa3   : > { %301 = vadd.xlane.f32.xlu2 %v300_v21  ;;  %313 = vadd.xlane.f32.xlu1 %v312_v22 }
  0xa4   : > { %325 = vadd.xlane.f32.xlu0 %v324_v20 }
  0xab   : > { %322 = vadd.xlane.f32.xlu2 %v321_v23 }
  0xcc   : > { %v285_v24 = vpop.xlane.xlu0 %284  ;;  %v288_v25 = vpop.xlane.xlu1 %287 }
 0x10e   : > { %v299_v26 = vpop.xlane.xlu2 %298  ;;  %v311_v27 = vpop.xlane.xlu0 %310 }
 0x10f   : > { %v328_v34 = vsel %vm327_vm1, %v285_v24, %v299_v26  ;;  %v673_v26 = vmov 0.0  }
 0x110   : > { %v331_v35 = vsel %vm330_vm3, %v328_v34, %v311_v27  ;;  %269 = vst.msk [vmem:[%s263_s8] sm:$0x1] %vm268_vm11, %v673_v26 }
 0x116   : > { %v302_v28 = vpop.xlane.xlu2 %301  ;;  %v314_v29 = vpop.xlane.xlu1 %313 }
 0x117   : > { %v329_v30 = vsel %vm327_vm1, %v288_v25, %v302_v28  ;;  %v326_v31 = vpop.xlane.xlu0 %325  ;;  %v392_v34 = vld [vmem:[%s263_s8] sm:$0x1] }
 0x118   : > { %v332_v32 = vsel %vm330_vm3, %v329_v30, %v314_v29 }
 0x119   : > { %v335_v33 = vsel %vm333_vm2, %v332_v32, %v326_v31 }
 0x11a   : > { %582 = vrsqrt.f32 %v335_v33  ;;  %vm355_vm4 = vcmp.eq.f32.partialorder %v335_v33, inf  ;;  %v358_v52 = vand.u32 2147483648, %v335_v33  ;;  %vm357_vm5 = vcmp.eq.f32.partialorder %v335_v33, 0.0 }
 0x11b   : > { %v367_v14 = vmul.f32 %v365_v4, %v335_v33 }
 0x11e   : > { %v323_v36 = vpop.xlane.xlu2 %322 }
 0x11f   : > { %v334_v37 = vsel %vm333_vm2, %v331_v35, %v323_v36 }
 0x120   : > { %v583_v38 = vpop.eup %582  ;;  %584 = vrsqrt.f32 %v334_v37  ;;  %vm343_vm6 = vcmp.eq.f32.partialorder %v334_v37, inf  ;;  %v346_v0 = vand.u32 2147483648, %v334_v37  ;;  %vm345_vm7 = vcmp.eq.f32.partialorder %v334_v37, 0.0 }
 0x121   : > { %v349_v39 = vmul.f32 %v583_v38, %v335_v33  ;;  %v366_v18 = vmul.f32 %v364_v13, %v334_v37 }
 0x123   : > { %v350_v41 = vmul.f32 %v583_v38, %v349_v39 }
 0x125   : > { %v351_v42 = vmul.f32 0.5, %v350_v41 }
 0x126   : > { %v585_v43 = vpop.eup %584 }
 0x127   : > { %v352_v45 = vsub.f32 1.5, %v351_v42  ;;  %v337_v46 = vmul.f32 %v585_v43, %v334_v37 }
 0x129   : > { %v338_v47 = vmul.f32 %v585_v43, %v337_v46  ;;  %v353_v48 = vmul.f32 %v583_v38, %v352_v45 }
 0x12b   : > { %v339_v50 = vmul.f32 0.5, %v338_v47  ;;  %v354_v51 = vmul.f32 %v353_v48, %v335_v33 }
 0x12d   : > { %v340_v53 = vsub.f32 1.5, %v339_v50  ;;  %v356_v54 = vsel %vm355_vm4, %v335_v33, %v354_v51 }
 0x12e   : > { %v359_v55 = vsel %vm357_vm5, %v358_v52, %v356_v54 }
 0x12f   : > { %v341_v57 = vmul.f32 %v585_v43, %v340_v53  ;;  %v361_v58 = vsub.f32 1.0, %v359_v55 }
 0x131   : > { %v342_v62 = vmul.f32 %v341_v57, %v334_v37  ;;  %v363_v63 = vmax.f32 %v361_v58, 0.0 }
 0x133   : > { %v344_v3 = vsel %vm343_vm6, %v334_v37, %v342_v62  ;;  %v369_v5 = vmul.f32 %v363_v63, %v363_v63 }
 0x134   : > { %v347_v7 = vsel %vm345_vm7, %v346_v0, %v344_v3 }
 0x135   : > { %v360_v9 = vsub.f32 1.0, %v347_v7  ;;  %v371_v10 = vmul.f32 %v369_v5, %v275_v60 }
 0x137   : > { %v362_v12 = vmax.f32 %v360_v9, 0.0  ;;  %v373_v17 = vadd.f32 %v371_v10, %v367_v14 }
 0x139   : > { %v368_v16 = vmul.f32 %v362_v12, %v362_v12  ;;  %v391_v21 = vsel %vm389_vm8, %v373_v17, 0.0 }
 0x13a   : > { %v395_v24 = vsel %vm393_vm10, %v391_v21, 0.0 }
 0x13b   : > { %v370_v19 = vmul.f32 %v368_v16, %v274_v6 }
 0x13d   : > { %v372_v20 = vadd.f32 %v370_v19, %v366_v18 }
 0x13f   : > { %v390_v22 = vsel %vm388_vm9, %v372_v20, 0.0 }
 0x140   : > { %v394_v23 = vsel %vm393_vm10, %v390_v22, 0.0 }
 0x141   : > { %v396_v25 = vadd.f32 %v395_v24, %v394_v23 }
 0x143   : > { %397 = vadd.xlane.f32.xlu1 %v396_v25 }
 0x1b6   : > { %v398_v27 = vpop.xlane.xlu1 %397 }
 0x1b7   : > { %v399_v28 = vrot.slane %v398_v27, 4 }
 0x1b9   : > { %v400_v29 = vadd.f32 %v399_v28, %v398_v27 }
 0x1bb   : > { %v401_v30 = vrot.slane %v400_v29, 2 }
 0x1bd   : > { %v402_v31 = vadd.f32 %v401_v30, %v400_v29 }
 0x1bf   : > { %v403_v32 = vrot.slane %v402_v31, 1 }
 0x1c1   : > { %v404_v33 = vadd.f32 %v403_v32, %v402_v31 }
 0x1c3   : > { %519 = vpush %v404_v33 }
 0x1f4   : > { %s520_s9 = spop %519 }
 0x1f5   : > { %v406_v35 = vstv %s520_s9 }
 0x1f6   : > { %v407_v36 = vadd.f32 %v406_v35, %v392_v34 }
 0x1f8   : > { %409 = vst.msk [vmem:[%s263_s8] sm:$0x1] %vm268_vm11, %v407_v36 }
 0x1f9 PF: > { %s16_s17 = sadd.s32 1, %s666_s17   ;;  %s811_s12 = smov %s650_s13 }
 0x1fa   : > { %p13_p1 = scmp.ge.s32.totalorder %s16_s17, 4   ;;  %s812_s13 = smov %s654_s14 }
 0x1fb   : > { %s813_s14 = smov %s743_s24  ;;  %s814_s15 = smov %s662_s16 }
 0x1fc   : > { %s815_s16 = smov %s817_s19  ;;  %15 = sbr.rel (!%p13_p1) target bundleno = 4 (0x4), region = 82 }
 0x201   :  { %427 = vsyncpa [#allocation3], 1 }
 0x202   :  { %429 = vsyncpa [#allocation3 + $0x1], 1 }

</bundles_post_ra>
